<compile_context>
chip_gen: v5e
topology: v5e:2x2
jax: 0.10.0
libtpu: 0.0.40
codegen_flags: <defaults>
</compile_context>

<pallas_src>
import functools

import jax
import jax.numpy as jnp
import numpy as np
from jax.experimental import pallas as pl
from jax.experimental.pallas import tpu as pltpu


def _flash_causal_attn_kernel(xq_ref, xkv_ref, wq_ref, bq_ref, wkv_ref, bkv_ref,
                              o_ref, q_sc, m_sc, l_sc, acc_sc, *, approx_recip):
    """One (batch-block, q-tile, kv-tile) step of causal self-attention."""
    bb, tq, d_model = xq_ref.shape
    tk = xkv_ref.shape[1]
    d = wq_ref.shape[1]
    mm_dtype = xq_ref.dtype                    # bf16 on the fast path, f32 otherwise

    qi = pl.program_id(1)
    ki = pl.program_id(2)
    nk = pl.num_programs(2)

    # ---- per (batch-block, q-tile) init: Q projection + online-softmax state ----
    @pl.when(ki == 0)
    def _init():
        xq2 = xq_ref[...].reshape(bb * tq, d_model)
        # 1/sqrt(d) score scale is already folded into wq/bq at trace time.
        q = jnp.dot(xq2, wq_ref[...], preferred_element_type=jnp.float32) + bq_ref[...]
        q_sc[...] = q.reshape(bb, tq, d).astype(q_sc.dtype)
        m_sc[...] = jnp.full(m_sc.shape, -jnp.inf, jnp.float32)
        l_sc[...] = jnp.zeros(l_sc.shape, jnp.float32)
        acc_sc[...] = jnp.zeros(acc_sc.shape, jnp.float32)

    # ---- causal tile pruning: skip KV tiles that are entirely in the future ----
    @pl.when(ki * tk <= (qi + 1) * tq - 1)
    def _compute():
        # Fused K|V projection for this KV tile (one MXU push, shared LHS).
        xkv2 = xkv_ref[...].reshape(bb * tk, d_model)
        kv = jnp.dot(xkv2, wkv_ref[...], preferred_element_type=jnp.float32) + bkv_ref[...]
        kv = kv.reshape(bb, tk, 2 * d)
        k = kv[:, :, :d].astype(mm_dtype)
        v = kv[:, :, d:].astype(mm_dtype)

        # Scores: contract on the feature axis directly (no explicit k transpose).
        s = jnp.einsum('bqd,bkd->bqk', q_sc[...], k,
                       preferred_element_type=jnp.float32)

        # In-kernel causal mask with global tile offsets (no (T,T) mask DMA).
        # TODO(synk): only the diagonal-straddling KV tile needs this compare/select;
        # fully-below-diagonal tiles could skip it to shave VPU work further.
        row = qi * tq + jax.lax.broadcasted_iota(jnp.int32, (tq, tk), 0)
        col = ki * tk + jax.lax.broadcasted_iota(jnp.int32, (tq, tk), 1)
        s = jnp.where((col <= row)[None, :, :], s, jnp.float32(-1e30))

        # Online softmax update (numerically stable; causal => l is never 0).
        m_prev = m_sc[...]
        m_new = jnp.maximum(m_prev, jnp.max(s, axis=-1, keepdims=True))
        alpha = jnp.exp(m_prev - m_new)
        p = jnp.exp(s - m_new)
        l_sc[...] = alpha * l_sc[...] + jnp.sum(p, axis=-1, keepdims=True)
        acc_sc[...] = alpha * acc_sc[...] + jnp.einsum(
            'bqk,bkd->bqd', p.astype(mm_dtype), v,
            preferred_element_type=jnp.float32)
        m_sc[...] = m_new

    # TODO(synk): nn.Dropout(weights) in the reference forward discards its result
    # (not reassigned), so dropout is a no-op here.

    # ---- finalize: normalize and store this q-tile's output ----
    @pl.when(ki == nk - 1)
    def _finalize():
        if approx_recip:
            inv_l = pl.reciprocal(l_sc[...], approx=True)   # EUP slot; ~1e-3 rel. err
        else:
            inv_l = 1.0 / l_sc[...]                         # exact (default; parity)
        o_ref[...] = (acc_sc[...] * inv_l).astype(o_ref.dtype)


def _largest_divisor(n, cap, multiple=1):
    """Largest divisor of n that is <= cap and (a multiple of `multiple` or == n)."""
    best = None
    for c in range(1, min(cap, n) + 1):
        if n % c == 0 and (c % multiple == 0 or c == n):
            best = c
    return best if best is not None else n


def causal_attention_pallas(x, wq, bq, wk, bk, wv, bv, *,
                            block_b=None, tq=None, tk=None,
                            use_bf16=False, out_dtype=jnp.float32,
                            approx_reciprocal=False,
                            single_buffer_weights=True,
                            vmem_limit_bytes=None):
    """Causal self-attention: softmax((xWq+bq)(xWk+bk)^T / sqrt(d)) @ (xWv+bv).

    Flash-style KV tiling keeps VMEM at O(tq*tk) independent of T.  use_bf16=True
    feeds bf16 operands to the MXU (beneficial on v5e, v6e and v7x alike; halves
    the x/w DMA); accumulation, softmax statistics and the mask stay f32.
    """
    B, T, d_model = x.shape
    d = wq.shape[1]
    out_dtype = np.dtype(out_dtype)

    # Keep reshapes / score tiles / stores sublane-aligned (8 rows for f32;
    # prefer multiples of 16 for tight bf16 sublane packing).
    assert T % 8 == 0, "T must be a multiple of 8 (sublane tiling)"

    # Fold the 1/sqrt(d) score scale into the Q projection (trace-time constant
    # fold) and fuse K|V weights/biases into one projection matmul per KV tile.
    scale = d ** -0.5
    wq_s = wq * scale
    bq_s = (jnp.asarray(bq).reshape(1, d) * scale).astype(jnp.float32)
    wkv = jnp.concatenate([wk, wv], axis=-1)                      # (d_model, 2d)
    bkv = jnp.concatenate([jnp.asarray(bk).reshape(1, d),
                           jnp.asarray(bv).reshape(1, d)], axis=-1).astype(jnp.float32)

    mm_dtype = jnp.bfloat16 if use_bf16 else jnp.float32
    x = x.astype(mm_dtype)
    wq_s = wq_s.astype(mm_dtype)
    wkv = wkv.astype(mm_dtype)

    # ---- tile selection (v7x-safe defaults; shrunk further below if needed) ----
    if tq is None:
        tq = _largest_divisor(T, 256, 8)
    if tk is None:
        tk = _largest_divisor(T, 512, 8)
    assert T % tq == 0 and T % tk == 0

    n_q_tiles = T // tq
    if block_b is None:
        # Fill MXU sublanes (target block_b*tq >= 256 rows per projection push)
        # while keeping >= 2 parallel grid steps so both v7x TensorCores stay busy.
        want = max(1, -(-256 // tq))
        block_b = 1
        for c in range(1, B + 1):
            if B % c:
                continue
            if c > want:
                continue
            if c > 1 and (B // c) * n_q_tiles < 2:
                continue
            block_b = c
    assert B % block_b == 0

    def vmem_estimate(bb, tq_, tk_):
        xi = np.dtype(mm_dtype).itemsize
        f32, lane = 4, 128
        pad = lambda n: -(-n // lane) * lane
        xq_b = bb * tq_ * pad(d_model) * xi
        xkv_b = bb * tk_ * pad(d_model) * xi
        w_b = (pad(d) + pad(2 * d)) * d_model * xi + (pad(d) + pad(2 * d)) * f32
        o_b = bb * tq_ * pad(d) * out_dtype.itemsize
        scr = bb * tq_ * (pad(d) * (xi + f32) + 2 * lane * f32)
        tmp = 3 * bb * tq_ * pad(tk_) * f32 + bb * tk_ * pad(2 * d) * f32 \
            + 2 * tq_ * pad(tk_) * 4
        wbuf = 1 if single_buffer_weights else 2
        return 2 * (xq_b + xkv_b) + wbuf * w_b + 2 * o_b + scr + tmp

    # Shrink tiles if the estimate would blow past a v7x-safe VMEM budget.
    budget = 48 << 20
    while vmem_estimate(block_b, tq, tk) > budget:
        if tk > 8:
            tk = _largest_divisor(T, max(8, tk // 2), 8)
        elif tq > 8:
            tq = _largest_divisor(T, max(8, tq // 2), 8)
        elif block_b > 1:
            block_b = _largest_divisor(B, max(1, block_b // 2), 1)
        else:
            break

    if vmem_limit_bytes is None:
        # Size the scoped-VMEM request from the actual blocks (cap: v7x 64 MiB).
        vmem_limit_bytes = int(min(max(2 * vmem_estimate(block_b, tq, tk), 32 << 20),
                                   64 << 20))

    # Advisory cost estimate so XLA schedules surrounding ops around the call.
    flops = (2 * B * T * d_model * d                        # Q projection
             + 2 * B * T * d_model * 2 * d * (T // tq)      # K/V projection per q-tile
             + 4 * B * T * T * d)                           # scores + PV (pre-pruning bound)
    bytes_accessed = (2 * x.size * np.dtype(mm_dtype).itemsize
                      + (wq_s.size + wkv.size) * np.dtype(mm_dtype).itemsize
                      + (bq_s.size + bkv.size) * 4
                      + B * T * d * out_dtype.itemsize)
    cost = pl.CostEstimate(flops=int(flops), transcendentals=int(B * T * T),
                           bytes_accessed=int(bytes_accessed))

    grid = (B // block_b, T // tq, T // tk)
    kernel = functools.partial(_flash_causal_attn_kernel,
                               approx_recip=approx_reciprocal)

    def call(weight_pipeline_mode):
        wkw = {} if weight_pipeline_mode is None else dict(pipeline_mode=weight_pipeline_mode)
        grid_spec = pltpu.PrefetchScalarGridSpec(
            num_scalar_prefetch=0,
            grid=grid,
            in_specs=[
                pl.BlockSpec((block_b, tq, d_model), lambda b, qi, ki: (b, qi, 0)),  # x (q rows)
                pl.BlockSpec((block_b, tk, d_model), lambda b, qi, ki: (b, ki, 0)),  # x (kv rows)
                pl.BlockSpec((d_model, d), lambda b, qi, ki: (0, 0), **wkw),          # wq * scale
                pl.BlockSpec((1, d), lambda b, qi, ki: (0, 0), **wkw),                # bq * scale
                pl.BlockSpec((d_model, 2 * d), lambda b, qi, ki: (0, 0), **wkw),      # [wk | wv]
                pl.BlockSpec((1, 2 * d), lambda b, qi, ki: (0, 0), **wkw),            # [bk | bv]
            ],
            # Output kept at width d (no 128-lane padding): saves ~8x output HBM
            # traffic at small d and the wrapper re-read; it is naturally lane-dense
            # whenever d % 128 == 0.
            out_specs=pl.BlockSpec((block_b, tq, d), lambda b, qi, ki: (b, qi, 0)),
            scratch_shapes=[
                pltpu.VMEM((block_b, tq, d), mm_dtype),      # q tile
                pltpu.VMEM((block_b, tq, 1), jnp.float32),   # running max m
                pltpu.VMEM((block_b, tq, 1), jnp.float32),   # running denom l
                pltpu.VMEM((block_b, tq, d), jnp.float32),   # output accumulator
            ])
        return pl.pallas_call(
            kernel,
            out_shape=jax.ShapeDtypeStruct((B, T, d), out_dtype),
            grid_spec=grid_spec,
            compiler_params=pltpu.CompilerParams(
                dimension_semantics=("parallel", "parallel", "arbitrary"),
                vmem_limit_bytes=vmem_limit_bytes),
            cost_estimate=cost,
        )(x, x, wq_s, bq_s, wkv, bkv)

    if single_buffer_weights:
        try:
            # Weights/biases are grid-invariant: single-buffer them so depth-2
            # pipelining doesn't hold two copies in VMEM (headroom on v7x 64 MiB).
            return call(pl.Buffered(1))
        except Exception:
            pass  # conservative fallback if this Pallas build rejects Buffered(1)
    return call(None)


def attention_ref(x, mask, wq, bq, wk, bk, wv, bv):
    """Pure-JAX reference mirroring PyTorch Attention.forward (HIGHEST precision so
    the comparison is not polluted by reduced-precision default matmul passes)."""
    hp = jax.lax.Precision.HIGHEST
    q = jnp.einsum('btm,md->btd', x, wq, precision=hp) + bq
    k = jnp.einsum('btm,md->btd', x, wk, precision=hp) + bk
    v = jnp.einsum('btm,md->btd', x, wv, precision=hp) + bv
    s = jnp.einsum('bqd,bkd->bqk', q, k, precision=hp) * (k.shape[-1] ** -0.5)
    s = jnp.where(mask == 0, -jnp.inf, s)
    p = jax.nn.softmax(s, axis=-1)
    return jnp.einsum('bqk,bkd->bqd', p, v, precision=hp)


if __name__ == "__main__":
    # Small shapes consistent with the module: Attention(d_model=32, d=16) as used
    # inside a 2-head MultiHeadAttention, batch=2, seq=8.
    B, T, d_model, d = 2, 8, 32, 16

    key = jax.random.PRNGKey(0)
    kx, kq, kbq, kk, kbk, kv, kbv = jax.random.split(key, 7)

    x = jax.random.normal(kx, (B, T, d_model), dtype=jnp.float32)

    lim = 1.0 / (d_model ** 0.5)
    wq = jax.random.uniform(kq, (d_model, d), jnp.float32, -lim, lim)
    bq = jax.random.uniform(kbq, (1, d), jnp.float32, -lim, lim)
    wk = jax.random.uniform(kk, (d_model, d), jnp.float32, -lim, lim)
    bk = jax.random.uniform(kbk, (1, d), jnp.float32, -lim, lim)
    wv = jax.random.uniform(kv, (d_model, d), jnp.float32, -lim, lim)
    bv = jax.random.uniform(kbv, (1, d), jnp.float32, -lim, lim)

    # Causal (tril) mask for the reference; the kernel builds the same mask in-kernel.
    mask = jnp.tril(jnp.ones((T, T), dtype=jnp.int32))

    ref = jax.block_until_ready(attention_ref(x, mask, wq, bq, wk, bk, wv, bv))

    # f32 path (exact softmax normalization by default).
    out = jax.block_until_ready(
        causal_attention_pallas(x, wq, bq, wk, bk, wv, bv))
    assert out.shape == (B, T, d)
    err = float(jnp.max(jnp.abs(out - ref)))
    assert err < 1e-2, f"f32 path mismatch vs reference (max abs err = {err})"

    # bf16-operand fast path with bf16 output (halves input/output HBM traffic);
    # accumulation and softmax remain f32.
    out_bf16 = jax.block_until_ready(
        causal_attention_pallas(x, wq, bq, wk, bk, wv, bv,
                                use_bf16=True, out_dtype=jnp.bfloat16))
    assert out_bf16.shape == (B, T, d)
    err_bf16 = float(jnp.max(jnp.abs(out_bf16.astype(jnp.float32) - ref)))
    assert err_bf16 < 1e-1, f"bf16 path mismatch vs reference (max abs err = {err_bf16})"

    print("KERNEL_OK")
</pallas_src>

<mosaic_0001>
module attributes {stable_mosaic.version = 11 : i64} {
  func.func @_flash_causal_attn_kernel(%arg0: i32, %arg1: i32, %arg2: i32, %arg3: memref<1x8x32xf32, #tpu.memory_space<vmem>>, %arg4: memref<1x8x32xf32, #tpu.memory_space<vmem>>, %arg5: memref<32x16xf32, #tpu.memory_space<vmem>>, %arg6: memref<1x16xf32, #tpu.memory_space<vmem>>, %arg7: memref<32x32xf32, #tpu.memory_space<vmem>>, %arg8: memref<1x32xf32, #tpu.memory_space<vmem>>, %arg9: memref<1x8x16xf32, #tpu.memory_space<vmem>>, %arg10: memref<1x8x16xf32, #tpu.memory_space<vmem>>, %arg11: memref<1x8x1xf32, #tpu.memory_space<vmem>>, %arg12: memref<1x8x1xf32, #tpu.memory_space<vmem>>, %arg13: memref<1x8x16xf32, #tpu.memory_space<vmem>>) attributes {dimension_semantics = [#tpu.dimension_semantics<parallel>, #tpu.dimension_semantics<parallel>, #tpu.dimension_semantics<arbitrary>], iteration_bounds = array<i64: 2, 1, 1>, scalar_prefetch = 0 : i64, scratch_operands = 4 : i64, tpu.core_type = #tpu.core_type<tc>, window_params = [{transform_indices = @transform_0, window_bounds = array<i64: 1, 8, 32>}, {transform_indices = @transform_1, window_bounds = array<i64: 1, 8, 32>}, {pipeline_mode = #tpu.pipeline_mode<synchronous>, transform_indices = @transform_2, window_bounds = array<i64: 32, 16>}, {pipeline_mode = #tpu.pipeline_mode<synchronous>, transform_indices = @transform_3, window_bounds = array<i64: 1, 16>}, {pipeline_mode = #tpu.pipeline_mode<synchronous>, transform_indices = @transform_4, window_bounds = array<i64: 32, 32>}, {pipeline_mode = #tpu.pipeline_mode<synchronous>, transform_indices = @transform_5, window_bounds = array<i64: 1, 32>}, {transform_indices = @transform_6, window_bounds = array<i64: 1, 8, 16>}]} {
    %c0_i32 = arith.constant 0 : i32
    %0 = arith.cmpi eq, %arg2, %c0_i32 : i32
    %1 = arith.extui %0 : i1 to i32
    %c0_i32_0 = arith.constant 0 : i32
    %2 = arith.cmpi ne, %1, %c0_i32_0 : i32
    scf.if %2 {
      %c0 = arith.constant 0 : index
      %c0_6 = arith.constant 0 : index
      %c0_7 = arith.constant 0 : index
      %13 = vector.load %arg3[%c0, %c0_6, %c0_7] : memref<1x8x32xf32, #tpu.memory_space<vmem>>, vector<1x8x32xf32>
      %14 = vector.shape_cast %13 : vector<1x8x32xf32> to vector<8x32xf32>
      %c0_8 = arith.constant 0 : index
      %c0_9 = arith.constant 0 : index
      %15 = vector.load %arg5[%c0_8, %c0_9] : memref<32x16xf32, #tpu.memory_space<vmem>>, vector<32x16xf32>
      %cst = arith.constant dense<0.000000e+00> : vector<8x16xf32>
      %16 = tpu.matmul %14, %15, %cst {dimension_numbers = #tpu.dot_dimension_numbers<[1], [0], [0], [1], [0, 0, 1, 1], [], []>} : vector<8x32xf32>, vector<32x16xf32>, vector<8x16xf32> -> vector<8x16xf32>
      %c0_10 = arith.constant 0 : index
      %c0_11 = arith.constant 0 : index
      %17 = vector.load %arg6[%c0_10, %c0_11] : memref<1x16xf32, #tpu.memory_space<vmem>>, vector<1x16xf32>
      %18 = vector.broadcast %17 : vector<1x16xf32> to vector<8x16xf32>
      %19 = arith.addf %16, %18 : vector<8x16xf32>
      %20 = vector.shape_cast %19 : vector<8x16xf32> to vector<1x8x16xf32>
      %c0_12 = arith.constant 0 : index
      %c0_13 = arith.constant 0 : index
      %c0_14 = arith.constant 0 : index
      %21 = vector.load %arg10[%c0_12, %c0_13, %c0_14] : memref<1x8x16xf32, #tpu.memory_space<vmem>>, vector<1x8x16xf32>
      tpu.vector_store %arg10[%c0_12, %c0_13, %c0_14], %20 {strides = array<i32>} : memref<1x8x16xf32, #tpu.memory_space<vmem>>, vector<1x8x16xf32>,
      %cst_15 = arith.constant 0xFF800000 : f32
      %22 = vector.broadcast %cst_15 : f32 to vector<1x8x1xf32>
      %c0_16 = arith.constant 0 : index
      %c0_17 = arith.constant 0 : index
      %c0_18 = arith.constant 0 : index
      %23 = vector.load %arg11[%c0_16, %c0_17, %c0_18] : memref<1x8x1xf32, #tpu.memory_space<vmem>>, vector<1x8x1xf32>
      tpu.vector_store %arg11[%c0_16, %c0_17, %c0_18], %22 {strides = array<i32>} : memref<1x8x1xf32, #tpu.memory_space<vmem>>, vector<1x8x1xf32>,
      %cst_19 = arith.constant 0.000000e+00 : f32
      %24 = vector.broadcast %cst_19 : f32 to vector<1x8x1xf32>
      %c0_20 = arith.constant 0 : index
      %c0_21 = arith.constant 0 : index
      %c0_22 = arith.constant 0 : index
      %25 = vector.load %arg12[%c0_20, %c0_21, %c0_22] : memref<1x8x1xf32, #tpu.memory_space<vmem>>, vector<1x8x1xf32>
      tpu.vector_store %arg12[%c0_20, %c0_21, %c0_22], %24 {strides = array<i32>} : memref<1x8x1xf32, #tpu.memory_space<vmem>>, vector<1x8x1xf32>,
      %cst_23 = arith.constant 0.000000e+00 : f32
      %26 = vector.broadcast %cst_23 : f32 to vector<1x8x16xf32>
      %c0_24 = arith.constant 0 : index
      %c0_25 = arith.constant 0 : index
      %c0_26 = arith.constant 0 : index
      %27 = vector.load %arg13[%c0_24, %c0_25, %c0_26] : memref<1x8x16xf32, #tpu.memory_space<vmem>>, vector<1x8x16xf32>
      tpu.vector_store %arg13[%c0_24, %c0_25, %c0_26], %26 {strides = array<i32>} : memref<1x8x16xf32, #tpu.memory_space<vmem>>, vector<1x8x16xf32>,
    } else {
    }
    %c8_i32 = arith.constant 8 : i32
    %3 = arith.muli %arg2, %c8_i32 : i32
    %c1_i32 = arith.constant 1 : i32
    %4 = arith.addi %arg1, %c1_i32 : i32
    %c8_i32_1 = arith.constant 8 : i32
    %5 = arith.muli %4, %c8_i32_1 : i32
    %c1_i32_2 = arith.constant 1 : i32
    %6 = arith.subi %5, %c1_i32_2 : i32
    %7 = arith.cmpi sle, %3, %6 : i32
    %8 = arith.extui %7 : i1 to i32
    %c0_i32_3 = arith.constant 0 : i32
    %9 = arith.cmpi ne, %8, %c0_i32_3 : i32
    scf.if %9 {
      %c0 = arith.constant 0 : index
      %c0_6 = arith.constant 0 : index
      %c0_7 = arith.constant 0 : index
      %13 = vector.load %arg4[%c0, %c0_6, %c0_7] : memref<1x8x32xf32, #tpu.memory_space<vmem>>, vector<1x8x32xf32>
      %14 = vector.shape_cast %13 : vector<1x8x32xf32> to vector<8x32xf32>
      %c0_8 = arith.constant 0 : index
      %c0_9 = arith.constant 0 : index
      %15 = vector.load %arg7[%c0_8, %c0_9] : memref<32x32xf32, #tpu.memory_space<vmem>>, vector<32x32xf32>
      %cst = arith.constant dense<0.000000e+00> : vector<8x32xf32>
      %16 = tpu.matmul %14, %15, %cst {dimension_numbers = #tpu.dot_dimension_numbers<[1], [0], [0], [1], [0, 0, 1, 1], [], []>} : vector<8x32xf32>, vector<32x32xf32>, vector<8x32xf32> -> vector<8x32xf32>
      %c0_10 = arith.constant 0 : index
      %c0_11 = arith.constant 0 : index
      %17 = vector.load %arg8[%c0_10, %c0_11] : memref<1x32xf32, #tpu.memory_space<vmem>>, vector<1x32xf32>
      %18 = vector.broadcast %17 : vector<1x32xf32> to vector<8x32xf32>
      %19 = arith.addf %16, %18 : vector<8x32xf32>
      %20 = vector.shape_cast %19 : vector<8x32xf32> to vector<1x8x32xf32>
      %21 = vector.extract_strided_slice %20 {offsets = [0, 0, 0], sizes = [1, 8, 16], strides = [1, 1, 1]} : vector<1x8x32xf32> to vector<1x8x16xf32>
      %22 = vector.extract_strided_slice %20 {offsets = [0, 0, 16], sizes = [1, 8, 16], strides = [1, 1, 1]} : vector<1x8x32xf32> to vector<1x8x16xf32>
      %c0_12 = arith.constant 0 : index
      %c0_13 = arith.constant 0 : index
      %c0_14 = arith.constant 0 : index
      %23 = vector.load %arg10[%c0_12, %c0_13, %c0_14] : memref<1x8x16xf32, #tpu.memory_space<vmem>>, vector<1x8x16xf32>
      "tpu.trace_start"() <{level = 10 : i32, message = "bqd,bkd->bqk"}> : () -> ()
      %cst_15 = arith.constant dense<0.000000e+00> : vector<1x8x8xf32>
      %24 = tpu.matmul %23, %21, %cst_15 {dimension_numbers = #tpu.dot_dimension_numbers<[2], [2], [1], [1], [0, 0, 0, 1, 1, 1], [0], [0]>} : vector<1x8x16xf32>, vector<1x8x16xf32>, vector<1x8x8xf32> -> vector<1x8x8xf32>
      "tpu.trace_stop"() : () -> ()
      %c8_i32_16 = arith.constant 8 : i32
      %25 = arith.muli %arg1, %c8_i32_16 : i32
      %26 = tpu.iota {dimensions = array<i32: 0>} : vector<8x8xi32>
      %27 = vector.broadcast %25 : i32 to vector<8x8xi32>
      %28 = arith.addi %27, %26 : vector<8x8xi32>
      %c8_i32_17 = arith.constant 8 : i32
      %29 = arith.muli %arg2, %c8_i32_17 : i32
      %30 = tpu.iota {dimensions = array<i32: 1>} : vector<8x8xi32>
      %31 = vector.broadcast %29 : i32 to vector<8x8xi32>
      %32 = arith.addi %31, %30 : vector<8x8xi32>
      %33 = arith.cmpi sle, %32, %28 : vector<8x8xi32>
      %34 = vector.shape_cast %33 : vector<8x8xi1> to vector<1x8x8xi1>
      %cst_18 = arith.constant -1.000000e+30 : f32
      %35 = vector.broadcast %cst_18 : f32 to vector<1x8x8xf32>
      %36 = arith.select %34, %24, %35 : vector<1x8x8xi1>, vector<1x8x8xf32>
      %c0_19 = arith.constant 0 : index
      %c0_20 = arith.constant 0 : index
      %c0_21 = arith.constant 0 : index
      %37 = vector.load %arg11[%c0_19, %c0_20, %c0_21] : memref<1x8x1xf32, #tpu.memory_space<vmem>>, vector<1x8x1xf32>
      %cst_22 = arith.constant dense<0xFF800000> : vector<1x8xf32>
      %38 = vector.multi_reduction <maximumf>, %36, %cst_22 [2] : vector<1x8x8xf32> to vector<1x8xf32>
      %39 = vector.shape_cast %38 : vector<1x8xf32> to vector<1x8x1xf32>
      %40 = arith.maximumf %37, %39 : vector<1x8x1xf32>
      %41 = arith.subf %37, %40 : vector<1x8x1xf32>
      %42 = math.exp %41 : vector<1x8x1xf32>
      %43 = vector.broadcast %40 : vector<1x8x1xf32> to vector<1x8x8xf32>
      %44 = arith.subf %36, %43 : vector<1x8x8xf32>
      %45 = math.exp %44 : vector<1x8x8xf32>
      %c0_23 = arith.constant 0 : index
      %c0_24 = arith.constant 0 : index
      %c0_25 = arith.constant 0 : index
      %46 = vector.load %arg12[%c0_23, %c0_24, %c0_25] : memref<1x8x1xf32, #tpu.memory_space<vmem>>, vector<1x8x1xf32>
      %47 = arith.mulf %42, %46 : vector<1x8x1xf32>
      %cst_26 = arith.constant dense<0.000000e+00> : vector<1x8xf32>
      %48 = vector.multi_reduction <add>, %45, %cst_26 [2] : vector<1x8x8xf32> to vector<1x8xf32>
      %49 = vector.shape_cast %48 : vector<1x8xf32> to vector<1x8x1xf32>
      %50 = arith.addf %47, %49 : vector<1x8x1xf32>
      %c0_27 = arith.constant 0 : index
      %c0_28 = arith.constant 0 : index
      %c0_29 = arith.constant 0 : index
      %51 = vector.load %arg12[%c0_27, %c0_28, %c0_29] : memref<1x8x1xf32, #tpu.memory_space<vmem>>, vector<1x8x1xf32>
      tpu.vector_store %arg12[%c0_27, %c0_28, %c0_29], %50 {strides = array<i32>} : memref<1x8x1xf32, #tpu.memory_space<vmem>>, vector<1x8x1xf32>,
      %c0_30 = arith.constant 0 : index
      %c0_31 = arith.constant 0 : index
      %c0_32 = arith.constant 0 : index
      %52 = vector.load %arg13[%c0_30, %c0_31, %c0_32] : memref<1x8x16xf32, #tpu.memory_space<vmem>>, vector<1x8x16xf32>
      %53 = vector.broadcast %42 : vector<1x8x1xf32> to vector<1x8x16xf32>
      %54 = arith.mulf %53, %52 : vector<1x8x16xf32>
      "tpu.trace_start"() <{level = 10 : i32, message = "bqk,bkd->bqd"}> : () -> ()
      %cst_33 = arith.constant dense<0.000000e+00> : vector<1x8x16xf32>
      %55 = tpu.matmul %45, %22, %cst_33 {dimension_numbers = #tpu.dot_dimension_numbers<[2], [1], [1], [2], [0, 0, 0, 1, 1, 2], [0], [0]>} : vector<1x8x8xf32>, vector<1x8x16xf32>, vector<1x8x16xf32> -> vector<1x8x16xf32>
      "tpu.trace_stop"() : () -> ()
      %56 = arith.addf %54, %55 : vector<1x8x16xf32>
      %c0_34 = arith.constant 0 : index
      %c0_35 = arith.constant 0 : index
      %c0_36 = arith.constant 0 : index
      %57 = vector.load %arg13[%c0_34, %c0_35, %c0_36] : memref<1x8x16xf32, #tpu.memory_space<vmem>>, vector<1x8x16xf32>
      tpu.vector_store %arg13[%c0_34, %c0_35, %c0_36], %56 {strides = array<i32>} : memref<1x8x16xf32, #tpu.memory_space<vmem>>, vector<1x8x16xf32>,
      %c0_37 = arith.constant 0 : index
      %c0_38 = arith.constant 0 : index
      %c0_39 = arith.constant 0 : index
      %58 = vector.load %arg11[%c0_37, %c0_38, %c0_39] : memref<1x8x1xf32, #tpu.memory_space<vmem>>, vector<1x8x1xf32>
      tpu.vector_store %arg11[%c0_37, %c0_38, %c0_39], %40 {strides = array<i32>} : memref<1x8x1xf32, #tpu.memory_space<vmem>>, vector<1x8x1xf32>,
    } else {
    }
    %c0_i32_4 = arith.constant 0 : i32
    %10 = arith.cmpi eq, %arg2, %c0_i32_4 : i32
    %11 = arith.extui %10 : i1 to i32
    %c0_i32_5 = arith.constant 0 : i32
    %12 = arith.cmpi ne, %11, %c0_i32_5 : i32
    scf.if %12 {
      %c0 = arith.constant 0 : index
      %c0_6 = arith.constant 0 : index
      %c0_7 = arith.constant 0 : index
      %13 = vector.load %arg12[%c0, %c0_6, %c0_7] : memref<1x8x1xf32, #tpu.memory_space<vmem>>, vector<1x8x1xf32>
      %cst = arith.constant 1.000000e+00 : f32
      %14 = vector.broadcast %cst : f32 to vector<1x8x1xf32>
      %15 = arith.divf %14, %13 : vector<1x8x1xf32>
      %c0_8 = arith.constant 0 : index
      %c0_9 = arith.constant 0 : index
      %c0_10 = arith.constant 0 : index
      %16 = vector.load %arg13[%c0_8, %c0_9, %c0_10] : memref<1x8x16xf32, #tpu.memory_space<vmem>>, vector<1x8x16xf32>
      %17 = vector.broadcast %15 : vector<1x8x1xf32> to vector<1x8x16xf32>
      %18 = arith.mulf %16, %17 : vector<1x8x16xf32>
      %c0_11 = arith.constant 0 : index
      %c0_12 = arith.constant 0 : index
      %c0_13 = arith.constant 0 : index
      %19 = vector.load %arg9[%c0_11, %c0_12, %c0_13] : memref<1x8x16xf32, #tpu.memory_space<vmem>>, vector<1x8x16xf32>
      tpu.vector_store %arg9[%c0_11, %c0_12, %c0_13], %18 {strides = array<i32>} : memref<1x8x16xf32, #tpu.memory_space<vmem>>, vector<1x8x16xf32>,
    } else {
    }
    return
  }
  func.func @transform_0(%arg0: i32, %arg1: i32, %arg2: i32) -> (i32, i32, i32) {
    %c0_i32 = arith.constant 0 : i32
    %c0_i32_0 = arith.constant 0 : i32
    return %arg0, %arg1, %c0_i32 : i32, i32, i32
  }
  func.func @transform_1(%arg0: i32, %arg1: i32, %arg2: i32) -> (i32, i32, i32) {
    %c0_i32 = arith.constant 0 : i32
    %c0_i32_0 = arith.constant 0 : i32
    return %arg0, %arg2, %c0_i32 : i32, i32, i32
  }
  func.func @transform_2(%arg0: i32, %arg1: i32, %arg2: i32) -> (i32, i32) {
    %c0_i32 = arith.constant 0 : i32
    %c0_i32_0 = arith.constant 0 : i32
    %c0_i32_1 = arith.constant 0 : i32
    return %c0_i32, %c0_i32_0 : i32, i32
  }
  func.func @transform_3(%arg0: i32, %arg1: i32, %arg2: i32) -> (i32, i32) {
    %c0_i32 = arith.constant 0 : i32
    %c0_i32_0 = arith.constant 0 : i32
    %c0_i32_1 = arith.constant 0 : i32
    return %c0_i32, %c0_i32_0 : i32, i32
  }
  func.func @transform_4(%arg0: i32, %arg1: i32, %arg2: i32) -> (i32, i32) {
    %c0_i32 = arith.constant 0 : i32
    %c0_i32_0 = arith.constant 0 : i32
    %c0_i32_1 = arith.constant 0 : i32
    return %c0_i32, %c0_i32_0 : i32, i32
  }
  func.func @transform_5(%arg0: i32, %arg1: i32, %arg2: i32) -> (i32, i32) {
    %c0_i32 = arith.constant 0 : i32
    %c0_i32_0 = arith.constant 0 : i32
    %c0_i32_1 = arith.constant 0 : i32
    return %c0_i32, %c0_i32_0 : i32, i32
  }
  func.func @transform_6(%arg0: i32, %arg1: i32, %arg2: i32) -> (i32, i32, i32) {
    %c0_i32 = arith.constant 0 : i32
    %c0_i32_0 = arith.constant 0 : i32
    return %arg0, %arg1, %c0_i32 : i32, i32, i32
  }
}

module attributes {stable_mosaic.version = 11 : i64} {
  func.func @_flash_causal_attn_kernel(%arg0: i32, %arg1: i32, %arg2: i32, %arg3: memref<1x8x32xf32, #tpu.memory_space<vmem>>, %arg4: memref<1x8x32xf32, #tpu.memory_space<vmem>>, %arg5: memref<32x16xf32, #tpu.memory_space<vmem>>, %arg6: memref<1x16xf32, #tpu.memory_space<vmem>>, %arg7: memref<32x32xf32, #tpu.memory_space<vmem>>, %arg8: memref<1x32xf32, #tpu.memory_space<vmem>>, %arg9: memref<1x8x16xf32, #tpu.memory_space<vmem>>, %arg10: memref<1x8x16xf32, #tpu.memory_space<vmem>>, %arg11: memref<1x8x1xf32, #tpu.memory_space<vmem>>, %arg12: memref<1x8x1xf32, #tpu.memory_space<vmem>>, %arg13: memref<1x8x16xf32, #tpu.memory_space<vmem>>) attributes {dimension_semantics = [#tpu.dimension_semantics<parallel>, #tpu.dimension_semantics<parallel>, #tpu.dimension_semantics<arbitrary>], iteration_bounds = array<i64: 2, 1, 1>, scalar_prefetch = 0 : i64, scratch_operands = 4 : i64, tpu.core_type = #tpu.core_type<tc>, window_params = [{transform_indices = @transform_0, window_bounds = array<i64: 1, 8, 32>}, {transform_indices = @transform_1, window_bounds = array<i64: 1, 8, 32>}, {pipeline_mode = #tpu.pipeline_mode<synchronous>, transform_indices = @transform_2, window_bounds = array<i64: 32, 16>}, {pipeline_mode = #tpu.pipeline_mode<synchronous>, transform_indices = @transform_3, window_bounds = array<i64: 1, 16>}, {pipeline_mode = #tpu.pipeline_mode<synchronous>, transform_indices = @transform_4, window_bounds = array<i64: 32, 32>}, {pipeline_mode = #tpu.pipeline_mode<synchronous>, transform_indices = @transform_5, window_bounds = array<i64: 1, 32>}, {transform_indices = @transform_6, window_bounds = array<i64: 1, 8, 16>}]} {
    %c0_i32 = arith.constant 0 : i32
    %0 = arith.cmpi eq, %arg2, %c0_i32 : i32
    %1 = arith.extui %0 : i1 to i32
    %c0_i32_0 = arith.constant 0 : i32
    %2 = arith.cmpi ne, %1, %c0_i32_0 : i32
    scf.if %2 {
      %c0 = arith.constant 0 : index
      %c0_6 = arith.constant 0 : index
      %c0_7 = arith.constant 0 : index
      %13 = vector.load %arg3[%c0, %c0_6, %c0_7] : memref<1x8x32xf32, #tpu.memory_space<vmem>>, vector<1x8x32xf32>
      %14 = vector.shape_cast %13 : vector<1x8x32xf32> to vector<8x32xf32>
      %c0_8 = arith.constant 0 : index
      %c0_9 = arith.constant 0 : index
      %15 = vector.load %arg5[%c0_8, %c0_9] : memref<32x16xf32, #tpu.memory_space<vmem>>, vector<32x16xf32>
      %cst = arith.constant dense<0.000000e+00> : vector<8x16xf32>
      %16 = tpu.matmul %14, %15, %cst {dimension_numbers = #tpu.dot_dimension_numbers<[1], [0], [0], [1], [0, 0, 1, 1], [], []>} : vector<8x32xf32>, vector<32x16xf32>, vector<8x16xf32> -> vector<8x16xf32>
      %c0_10 = arith.constant 0 : index
      %c0_11 = arith.constant 0 : index
      %17 = vector.load %arg6[%c0_10, %c0_11] : memref<1x16xf32, #tpu.memory_space<vmem>>, vector<1x16xf32>
      %18 = vector.broadcast %17 : vector<1x16xf32> to vector<8x16xf32>
      %19 = arith.addf %16, %18 : vector<8x16xf32>
      %20 = vector.shape_cast %19 : vector<8x16xf32> to vector<1x8x16xf32>
      %c0_12 = arith.constant 0 : index
      %c0_13 = arith.constant 0 : index
      %c0_14 = arith.constant 0 : index
      %21 = vector.load %arg10[%c0_12, %c0_13, %c0_14] : memref<1x8x16xf32, #tpu.memory_space<vmem>>, vector<1x8x16xf32>
      tpu.vector_store %arg10[%c0_12, %c0_13, %c0_14], %20 {strides = array<i32>} : memref<1x8x16xf32, #tpu.memory_space<vmem>>, vector<1x8x16xf32>,
      %cst_15 = arith.constant 0xFF800000 : f32
      %22 = vector.broadcast %cst_15 : f32 to vector<1x8x1xf32>
      %c0_16 = arith.constant 0 : index
      %c0_17 = arith.constant 0 : index
      %c0_18 = arith.constant 0 : index
      %23 = vector.load %arg11[%c0_16, %c0_17, %c0_18] : memref<1x8x1xf32, #tpu.memory_space<vmem>>, vector<1x8x1xf32>
      tpu.vector_store %arg11[%c0_16, %c0_17, %c0_18], %22 {strides = array<i32>} : memref<1x8x1xf32, #tpu.memory_space<vmem>>, vector<1x8x1xf32>,
      %cst_19 = arith.constant 0.000000e+00 : f32
      %24 = vector.broadcast %cst_19 : f32 to vector<1x8x1xf32>
      %c0_20 = arith.constant 0 : index
      %c0_21 = arith.constant 0 : index
      %c0_22 = arith.constant 0 : index
      %25 = vector.load %arg12[%c0_20, %c0_21, %c0_22] : memref<1x8x1xf32, #tpu.memory_space<vmem>>, vector<1x8x1xf32>
      tpu.vector_store %arg12[%c0_20, %c0_21, %c0_22], %24 {strides = array<i32>} : memref<1x8x1xf32, #tpu.memory_space<vmem>>, vector<1x8x1xf32>,
      %cst_23 = arith.constant 0.000000e+00 : f32
      %26 = vector.broadcast %cst_23 : f32 to vector<1x8x16xf32>
      %c0_24 = arith.constant 0 : index
      %c0_25 = arith.constant 0 : index
      %c0_26 = arith.constant 0 : index
      %27 = vector.load %arg13[%c0_24, %c0_25, %c0_26] : memref<1x8x16xf32, #tpu.memory_space<vmem>>, vector<1x8x16xf32>
      tpu.vector_store %arg13[%c0_24, %c0_25, %c0_26], %26 {strides = array<i32>} : memref<1x8x16xf32, #tpu.memory_space<vmem>>, vector<1x8x16xf32>,
    } else {
    }
    %c8_i32 = arith.constant 8 : i32
    %3 = arith.muli %arg2, %c8_i32 : i32
    %c1_i32 = arith.constant 1 : i32
    %4 = arith.addi %arg1, %c1_i32 : i32
    %c8_i32_1 = arith.constant 8 : i32
    %5 = arith.muli %4, %c8_i32_1 : i32
    %c1_i32_2 = arith.constant 1 : i32
    %6 = arith.subi %5, %c1_i32_2 : i32
    %7 = arith.cmpi sle, %3, %6 : i32
    %8 = arith.extui %7 : i1 to i32
    %c0_i32_3 = arith.constant 0 : i32
    %9 = arith.cmpi ne, %8, %c0_i32_3 : i32
    scf.if %9 {
      %c0 = arith.constant 0 : index
      %c0_6 = arith.constant 0 : index
      %c0_7 = arith.constant 0 : index
      %13 = vector.load %arg4[%c0, %c0_6, %c0_7] : memref<1x8x32xf32, #tpu.memory_space<vmem>>, vector<1x8x32xf32>
      %14 = vector.shape_cast %13 : vector<1x8x32xf32> to vector<8x32xf32>
      %c0_8 = arith.constant 0 : index
      %c0_9 = arith.constant 0 : index
      %15 = vector.load %arg7[%c0_8, %c0_9] : memref<32x32xf32, #tpu.memory_space<vmem>>, vector<32x32xf32>
      %cst = arith.constant dense<0.000000e+00> : vector<8x32xf32>
      %16 = tpu.matmul %14, %15, %cst {dimension_numbers = #tpu.dot_dimension_numbers<[1], [0], [0], [1], [0, 0, 1, 1], [], []>} : vector<8x32xf32>, vector<32x32xf32>, vector<8x32xf32> -> vector<8x32xf32>
      %c0_10 = arith.constant 0 : index
      %c0_11 = arith.constant 0 : index
      %17 = vector.load %arg8[%c0_10, %c0_11] : memref<1x32xf32, #tpu.memory_space<vmem>>, vector<1x32xf32>
      %18 = vector.broadcast %17 : vector<1x32xf32> to vector<8x32xf32>
      %19 = arith.addf %16, %18 : vector<8x32xf32>
      %20 = vector.shape_cast %19 : vector<8x32xf32> to vector<1x8x32xf32>
      %21 = vector.extract_strided_slice %20 {offsets = [0, 0, 0], sizes = [1, 8, 16], strides = [1, 1, 1]} : vector<1x8x32xf32> to vector<1x8x16xf32>
      %22 = vector.extract_strided_slice %20 {offsets = [0, 0, 16], sizes = [1, 8, 16], strides = [1, 1, 1]} : vector<1x8x32xf32> to vector<1x8x16xf32>
      %c0_12 = arith.constant 0 : index
      %c0_13 = arith.constant 0 : index
      %c0_14 = arith.constant 0 : index
      %23 = vector.load %arg10[%c0_12, %c0_13, %c0_14] : memref<1x8x16xf32, #tpu.memory_space<vmem>>, vector<1x8x16xf32>
      "tpu.trace_start"() <{level = 10 : i32, message = "bqd,bkd->bqk"}> : () -> ()
      %cst_15 = arith.constant dense<0.000000e+00> : vector<1x8x8xf32>
      %24 = tpu.matmul %23, %21, %cst_15 {dimension_numbers = #tpu.dot_dimension_numbers<[2], [2], [1], [1], [0, 0, 0, 1, 1, 1], [0], [0]>} : vector<1x8x16xf32>, vector<1x8x16xf32>, vector<1x8x8xf32> -> vector<1x8x8xf32>
      "tpu.trace_stop"() : () -> ()
      %c8_i32_16 = arith.constant 8 : i32
      %25 = arith.muli %arg1, %c8_i32_16 : i32
      %26 = tpu.iota {dimensions = array<i32: 0>} : vector<8x8xi32>
      %27 = vector.broadcast %25 : i32 to vector<8x8xi32>
      %28 = arith.addi %27, %26 : vector<8x8xi32>
      %c8_i32_17 = arith.constant 8 : i32
      %29 = arith.muli %arg2, %c8_i32_17 : i32
      %30 = tpu.iota {dimensions = array<i32: 1>} : vector<8x8xi32>
      %31 = vector.broadcast %29 : i32 to vector<8x8xi32>
      %32 = arith.addi %31, %30 : vector<8x8xi32>
      %33 = arith.cmpi sle, %32, %28 : vector<8x8xi32>
      %34 = vector.shape_cast %33 : vector<8x8xi1> to vector<1x8x8xi1>
      %cst_18 = arith.constant -1.000000e+30 : f32
      %35 = vector.broadcast %cst_18 : f32 to vector<1x8x8xf32>
      %36 = arith.select %34, %24, %35 : vector<1x8x8xi1>, vector<1x8x8xf32>
      %c0_19 = arith.constant 0 : index
      %c0_20 = arith.constant 0 : index
      %c0_21 = arith.constant 0 : index
      %37 = vector.load %arg11[%c0_19, %c0_20, %c0_21] : memref<1x8x1xf32, #tpu.memory_space<vmem>>, vector<1x8x1xf32>
      %cst_22 = arith.constant dense<0xFF800000> : vector<1x8xf32>
      %38 = vector.multi_reduction <maximumf>, %36, %cst_22 [2] : vector<1x8x8xf32> to vector<1x8xf32>
      %39 = vector.shape_cast %38 : vector<1x8xf32> to vector<1x8x1xf32>
      %40 = arith.maximumf %37, %39 : vector<1x8x1xf32>
      %41 = arith.subf %37, %40 : vector<1x8x1xf32>
      %42 = math.exp %41 : vector<1x8x1xf32>
      %43 = vector.broadcast %40 : vector<1x8x1xf32> to vector<1x8x8xf32>
      %44 = arith.subf %36, %43 : vector<1x8x8xf32>
      %45 = math.exp %44 : vector<1x8x8xf32>
      %c0_23 = arith.constant 0 : index
      %c0_24 = arith.constant 0 : index
      %c0_25 = arith.constant 0 : index
      %46 = vector.load %arg12[%c0_23, %c0_24, %c0_25] : memref<1x8x1xf32, #tpu.memory_space<vmem>>, vector<1x8x1xf32>
      %47 = arith.mulf %42, %46 : vector<1x8x1xf32>
      %cst_26 = arith.constant dense<0.000000e+00> : vector<1x8xf32>
      %48 = vector.multi_reduction <add>, %45, %cst_26 [2] : vector<1x8x8xf32> to vector<1x8xf32>
      %49 = vector.shape_cast %48 : vector<1x8xf32> to vector<1x8x1xf32>
      %50 = arith.addf %47, %49 : vector<1x8x1xf32>
      %c0_27 = arith.constant 0 : index
      %c0_28 = arith.constant 0 : index
      %c0_29 = arith.constant 0 : index
      %51 = vector.load %arg12[%c0_27, %c0_28, %c0_29] : memref<1x8x1xf32, #tpu.memory_space<vmem>>, vector<1x8x1xf32>
      tpu.vector_store %arg12[%c0_27, %c0_28, %c0_29], %50 {strides = array<i32>} : memref<1x8x1xf32, #tpu.memory_space<vmem>>, vector<1x8x1xf32>,
      %c0_30 = arith.constant 0 : index
      %c0_31 = arith.constant 0 : index
      %c0_32 = arith.constant 0 : index
      %52 = vector.load %arg13[%c0_30, %c0_31, %c0_32] : memref<1x8x16xf32, #tpu.memory_space<vmem>>, vector<1x8x16xf32>
      %53 = vector.broadcast %42 : vector<1x8x1xf32> to vector<1x8x16xf32>
      %54 = arith.mulf %53, %52 : vector<1x8x16xf32>
      "tpu.trace_start"() <{level = 10 : i32, message = "bqk,bkd->bqd"}> : () -> ()
      %cst_33 = arith.constant dense<0.000000e+00> : vector<1x8x16xf32>
      %55 = tpu.matmul %45, %22, %cst_33 {dimension_numbers = #tpu.dot_dimension_numbers<[2], [1], [1], [2], [0, 0, 0, 1, 1, 2], [0], [0]>} : vector<1x8x8xf32>, vector<1x8x16xf32>, vector<1x8x16xf32> -> vector<1x8x16xf32>
      "tpu.trace_stop"() : () -> ()
      %56 = arith.addf %54, %55 : vector<1x8x16xf32>
      %c0_34 = arith.constant 0 : index
      %c0_35 = arith.constant 0 : index
      %c0_36 = arith.constant 0 : index
      %57 = vector.load %arg13[%c0_34, %c0_35, %c0_36] : memref<1x8x16xf32, #tpu.memory_space<vmem>>, vector<1x8x16xf32>
      tpu.vector_store %arg13[%c0_34, %c0_35, %c0_36], %56 {strides = array<i32>} : memref<1x8x16xf32, #tpu.memory_space<vmem>>, vector<1x8x16xf32>,
      %c0_37 = arith.constant 0 : index
      %c0_38 = arith.constant 0 : index
      %c0_39 = arith.constant 0 : index
      %58 = vector.load %arg11[%c0_37, %c0_38, %c0_39] : memref<1x8x1xf32, #tpu.memory_space<vmem>>, vector<1x8x1xf32>
      tpu.vector_store %arg11[%c0_37, %c0_38, %c0_39], %40 {strides = array<i32>} : memref<1x8x1xf32, #tpu.memory_space<vmem>>, vector<1x8x1xf32>,
    } else {
    }
    %c0_i32_4 = arith.constant 0 : i32
    %10 = arith.cmpi eq, %arg2, %c0_i32_4 : i32
    %11 = arith.extui %10 : i1 to i32
    %c0_i32_5 = arith.constant 0 : i32
    %12 = arith.cmpi ne, %11, %c0_i32_5 : i32
    scf.if %12 {
      %c0 = arith.constant 0 : index
      %c0_6 = arith.constant 0 : index
      %c0_7 = arith.constant 0 : index
      %13 = vector.load %arg12[%c0, %c0_6, %c0_7] : memref<1x8x1xf32, #tpu.memory_space<vmem>>, vector<1x8x1xf32>
      %cst = arith.constant 1.000000e+00 : f32
      %14 = vector.broadcast %cst : f32 to vector<1x8x1xf32>
      %15 = arith.divf %14, %13 : vector<1x8x1xf32>
      %c0_8 = arith.constant 0 : index
      %c0_9 = arith.constant 0 : index
      %c0_10 = arith.constant 0 : index
      %16 = vector.load %arg13[%c0_8, %c0_9, %c0_10] : memref<1x8x16xf32, #tpu.memory_space<vmem>>, vector<1x8x16xf32>
      %17 = vector.broadcast %15 : vector<1x8x1xf32> to vector<1x8x16xf32>
      %18 = arith.mulf %16, %17 : vector<1x8x16xf32>
      %c0_11 = arith.constant 0 : index
      %c0_12 = arith.constant 0 : index
      %c0_13 = arith.constant 0 : index
      %19 = vector.load %arg9[%c0_11, %c0_12, %c0_13] : memref<1x8x16xf32, #tpu.memory_space<vmem>>, vector<1x8x16xf32>
      tpu.vector_store %arg9[%c0_11, %c0_12, %c0_13], %18 {strides = array<i32>} : memref<1x8x16xf32, #tpu.memory_space<vmem>>, vector<1x8x16xf32>,
    } else {
    }
    return
  }
  func.func @transform_0(%arg0: i32, %arg1: i32, %arg2: i32) -> (i32, i32, i32) {
    %c0_i32 = arith.constant 0 : i32
    %c0_i32_0 = arith.constant 0 : i32
    return %arg0, %arg1, %c0_i32 : i32, i32, i32
  }
  func.func @transform_1(%arg0: i32, %arg1: i32, %arg2: i32) -> (i32, i32, i32) {
    %c0_i32 = arith.constant 0 : i32
    %c0_i32_0 = arith.constant 0 : i32
    return %arg0, %arg2, %c0_i32 : i32, i32, i32
  }
  func.func @transform_2(%arg0: i32, %arg1: i32, %arg2: i32) -> (i32, i32) {
    %c0_i32 = arith.constant 0 : i32
    %c0_i32_0 = arith.constant 0 : i32
    %c0_i32_1 = arith.constant 0 : i32
    return %c0_i32, %c0_i32_0 : i32, i32
  }
  func.func @transform_3(%arg0: i32, %arg1: i32, %arg2: i32) -> (i32, i32) {
    %c0_i32 = arith.constant 0 : i32
    %c0_i32_0 = arith.constant 0 : i32
    %c0_i32_1 = arith.constant 0 : i32
    return %c0_i32, %c0_i32_0 : i32, i32
  }
  func.func @transform_4(%arg0: i32, %arg1: i32, %arg2: i32) -> (i32, i32) {
    %c0_i32 = arith.constant 0 : i32
    %c0_i32_0 = arith.constant 0 : i32
    %c0_i32_1 = arith.constant 0 : i32
    return %c0_i32, %c0_i32_0 : i32, i32
  }
  func.func @transform_5(%arg0: i32, %arg1: i32, %arg2: i32) -> (i32, i32) {
    %c0_i32 = arith.constant 0 : i32
    %c0_i32_0 = arith.constant 0 : i32
    %c0_i32_1 = arith.constant 0 : i32
    return %c0_i32, %c0_i32_0 : i32, i32
  }
  func.func @transform_6(%arg0: i32, %arg1: i32, %arg2: i32) -> (i32, i32, i32) {
    %c0_i32 = arith.constant 0 : i32
    %c0_i32_0 = arith.constant 0 : i32
    return %arg0, %arg1, %c0_i32 : i32, i32, i32
  }
}

</mosaic_0001>

<bundles_post_ra>
// kernel: tpu_custom_call.1
= control target key start
LH: loop header
LB: loop body
LE: loop exit
PB: predicated region body
PF: predicated region fallthrough
CT: control target
= control target key end

     0   :  { %11 = vsyncpa [#allocation7], 0  ;;  %s1068_s0 = inlined_call_operand.vmem [shape: f32[2,8,32], index: 0, kind: input, shape index: {}]   ;;  %s1069_s1 = inlined_call_operand.hbm [shape: f32[2,8,32], index: 1, kind: input, shape index: {}]   ;;  %s1070_s2 = inlined_call_operand.vmem [shape: f32[32,16], index: 2, kind: input, shape index: {}]   ;;  %s1071_s3 = inlined_call_operand.vmem [shape: f32[1,16], index: 3, kind: input, shape index: {}]   ;;  %s1072_s4 = inlined_call_operand.vmem [shape: f32[32,32], index: 4, kind: input, shape index: {}]   ;;  %s1073_s5 = inlined_call_operand.vmem [shape: f32[1,32], index: 5, kind: input, shape index: {}]   ;;  %s1074_s6 = inlined_call_operand.hbm [shape: f32[2,8,16], index: 6, kind: output, shape index: {}]  }
   0x1   :  { %13 = vsyncpa [#allocation7 + $0x1], 0 }
   0x2   :  { %14 = vsyncpa [#allocation8], 0 }
   0x3   :  { %16 = vsyncpa [#allocation8 + $0x1], 0  ;;  %s896_s21 = smov 0   ;;  %s898_s22 = smov 0  }
   0x4   :  { %s900_s23 = smov 0   ;;  %s902_s24 = smov 0  }
   0x5   :  { %s904_s25 = smov 0   ;;  %s906_s26 = smov 0  }
   0x6 LB: > { %s648_s27 = sadd.s32 4294967295, %s855_s26   ;;  %s649_s28 = sadd.s32 4294967294, %s855_s26   ;;  %s855_s26 = sphi %s906_s26, %s22_s26   ;;  %s851_s25 = sphi %s904_s25, %s1085_s25   ;;  %s847_s24 = sphi %s902_s24, %s1084_s24   ;;  %s843_s23 = sphi %s900_s23, %s1083_s23   ;;  %s839_s22 = sphi %s898_s22, %s1082_s22   ;;  %s835_s21 = sphi %s896_s21, %s1081_s21  }
   0x7   : > { %s41_s29 = sadd.s32 1, %s851_s25  ;;  %s78_s30 = sadd.s32 1, %s843_s23 }
   0x8   : > { %p43_p0 = scmp.ge.s32.totalorder %s41_s29, 2  ;;  %p85_p1 = scmp.ne.s32.totalorder %s843_s23, %s839_s22 }
   0x9   : > { %p86_p2 = scmp.eq.s32.totalorder %s855_s26, 0  ;;  %p91_p3 = scmp.ne.s32.totalorder %s839_s22, %s835_s21 }
   0xa   : > { %s1087_s29 = smov (%p43_p0, %s41_s29), 0  ;;  %p92_p5 = scmp.eq.s32.totalorder %s648_s27, 0 }
   0xb   : > { %p937_p4 = por %p86_p2, %p85_p1  ;;  %s73_s8 = ssub.s32 %s851_s25, %s1087_s29 }
   0xc   : > { %p201_p6 = scmp.eq.s32.totalorder %s648_s27, 1  ;;  %p76_p7 = scmp.eq.s32.totalorder %s73_s8, 0 }
   0xd   : > { %p943_p8 = por %p92_p5, %p91_p3  ;;  %p207_p10 = scmp.eq.s32.totalorder %s649_s28, 1 }
   0xe   : > { %p947_p9 = por %p201_p6, %p85_p1  ;;  %p651_p12 = scmp.ge.s32.totalorder %s855_s26, 2 }
   0xf   : > { %s952_s11 = scalar_select %p76_p7, %s843_s23, %s78_s30  }
  0x10   : > { %p954_p11 = por %p207_p10, %p91_p3  ;;  %p679_p13 = scmp.lt.s32.totalorder %s855_s26, 2 }
  0x11   : > { %s249_s13 = sand.u32 1, %s843_s23   ;;  %s653_s15 = sshll.u32 %s851_s25, 3 }
  0x12   : > { %s652_s14 = sshll.u32 %s249_s13, 3  ;;  %s258_s18 = scalar_lea.hbm %s1069_s1, %s653_s15 }
  0x13   : > { %s253_s19 = scalar_lea.vmem [#allocation6], %s652_s14  ;;  %s260_s27 = sshll.u32 %s258_s18, 4  ;;  %s261_s27 = int_to_ptr.hbm [resolvable:$true] %s260_s27 }
  0x14   : > { %s262_s20 = sshll.u32 %s253_s19, 4  ;;  %p672_p0 = pnand %p679_p13, %p937_p4  ;;  %s263_s20 = int_to_ptr.vmem [resolvable:$true] %s262_s20 }
  0x15   : > { %p654_p1 = scmp.ge.s32.totalorder %s855_s26, 1  ;;  %p267_p2 = scmp.lt.s32.totalorder %s855_s26, 3 }
  0x16   : > { %s250_s28 = scalar_lea.sflag [#allocation7], %s249_s13 }
  0x17   : > { %674 = dma.hbm_to_vmem [thread:$0]  (!%p672_p0), %s261_s27, 128, %s263_s20, %s250_s28  }
  0x18   : > { %p268_p3 = pnand %p654_p1, %p267_p2 }
  0x19   : > { %s970_s30 = sand.u32 (!%p268_p3), 1, %s839_s22  }
  0x1a   : > { %271 = sbr.rel (%p268_p3) target bundleno = 794 (0x31a), region = 44  ;;  %s1075_s8 = sshll.u32 (!%p268_p3), %s970_s30, 3 }
  0x1b   : > { %s274_s14 = scalar_lea.sflag (!%p268_p3), [#allocation7], %s970_s30  ;;  %s277_s15 = scalar_lea.vmem (!%p268_p3), [#allocation6], %s1075_s8 }
  0x1f   : > { %826 = dma.done.wait (%p943_p8), %s274_s14, 128  }
  0x20   : > { %828 = vsyncadd (%p943_p8), %s274_s14, 4294967168  ;;  %p314_p4 = scmp.lt.s32.totalorder %s847_s24, 1  ;;  %v329_v0 = vld [vmem:[%s1070_s2 + $0x18] sm:$0xff]  ;;  %v328_v1 = vld [vmem:[%s1070_s2 + $0x10] sm:$0xff]  ;;  %vm334_vm0 = vcmask 261120   ;;  %vm358_vm1 = vcmask 130048   ;;  %v434_v20 = vlaneseq }
  0x21   : > { %350 = vmatpush.msra.mxu0 %v329_v0  ;;  %v376_v2 = vld [vmem:[%s1072_s4 + $0x18] sm:$0xff]  ;;  %v327_v3 = vld [vmem:[%s1070_s2 + $0x8] sm:$0xff]  ;;  %v375_v4 = vld [vmem:[%s1072_s4 + $0x10] sm:$0xff]  ;;  %v857_v10 = vmov 0.0   ;;  %vm360_vm2 = vcmask 7168   ;;  %v859_v18 = vmov -inf  }
  0x22   : > { %s315_s7 = scalar_select %p314_p4, %s847_s24, 1  ;;  %397 = vmatpush.msra.mxu1 %v376_v2  ;;  %v374_v5 = vld [vmem:[%s1072_s4 + $0x8] sm:$0xff]  ;;  %v326_v6 = vld [vmem:[%s1070_s2] sm:$0xff]  ;;  %363 = vst.msk [vmem:[#allocation5] sm:$0xff] %vm358_vm1, %v857_v10  ;;  %v435_v21 = vshrl.u32 %v434_v20, 7  ;;  %v439_v22 = vand.u32 127, %v434_v20 }
  0x23   : > { %351 = vmatpush.msra.mxu0 %v328_v1  ;;  %v373_v8 = vld [vmem:[%s1072_s4] sm:$0xff]  ;;  %361 = vst.msk [vmem:[#allocation3] sm:$0xff] %vm360_vm2, %v859_v18  ;;  %vm445_vm4 = vcmask 64512   ;;  %v860_v26 = vmov 0   ;;  %s664_s16 = sshll.u32 %s847_s24, 3  ;;  %s1080_s20 = sshll.u32 %s970_s30, 3 }
  0x24   : > { %s657_s13 = sshll.u32 %s315_s7, 3  ;;  %398 = vmatpush.msra.mxu1 %v375_v4  ;;  %v372_v9 = vld [vmem:[%s277_s15] sm:$0xff]  ;;  %s858_s15 = smov 112   ;;  %362 = vst.msk [vmem:[#allocation4] sm:$0xff] %vm360_vm2, %v857_v10  ;;  %vm442_vm3 = vcmp.le.s32.totalorder %v439_v22, %v435_v21  ;;  %733 = vset.pattern.permute.xlu0 %v860_v26 }
  0x25   : > { %s320_s8 = scalar_lea.vmem %s1068_s0, %s657_s13  ;;  %352 = vmatpush.msra.mxu0 %v327_v3  ;;  %v735_v11 = vld [vmem:[%s1071_s3] ss:$0 sm:$0xff]  ;;  %734 = vset.pattern.permute.xlu2 %v860_v26  ;;  %s545_s19 = scalar_lea.hbm %s1074_s6, %s664_s16 }
  0x26   : > { %v325_v7 = vld [vmem:[%s320_s8] sm:$0xff]  ;;  %399 = vmatpush.msra.mxu1 %v374_v5  ;;  %s313_s27 = scalar_lea.vmem [#allocation9], %s1080_s20  ;;  %s549_s28 = sshll.u32 %s545_s19, 4  ;;  %s550_s28 = int_to_ptr.hbm [resolvable:$true] %s549_s28 }
  0x27   : > { %353 = vmatpush.msra.mxu0 %v326_v6  ;;  %v736_v12 = vld [vmem:[%s1073_s5] ss:$0 sm:$0xff]  ;;  %s547_s9 = sshll.u32 %s313_s27, 4  ;;  %s534_s13 = scalar_lea.sflag [#allocation8], %s970_s30  ;;  %s548_s9 = int_to_ptr.vmem [resolvable:$true] %s547_s9 }
  0x28   : > { %658 = vmatmul.msk.f32.vlgmr.msra.gmra.mxu0 %vm334_vm0, %v325_v7  ;;  %400 = vmatpush.msra.mxu1 %v373_v8  ;;  %s787_s14 = sshra.s32 %s550_s28, 4  ;;  %s788_s14 = int_to_ptr.hbm [resolvable:$true] %s787_s14 }
  0x29   : > { %659 = vmatmul.msk.f32.vlgmr.msra.gmra.mxu1 %vm334_vm0, %v372_v9  ;;  %v469_v43 = vld [vmem:[#allocation5] sm:$0xff]  ;;  %s789_s24 = scalar_lea.hbm %s788_s14, 8  ;;  %p794_p8 = scmp.lt.s32.totalorder %s788_s14, %s1074_s6 }
  0x2a   : > { %v444_v27 = vld [vmem:[#allocation3] sm:$0xff]  ;;  %p790_p5 = scmp.ne.s32.totalorder %s788_s14, %s789_s24 }
  0x2b   : > { %v461_v38 = vld [vmem:[#allocation4] sm:$0xff] }
  0x2c   : > { %p791_p6 = pnand %p790_p5, %p947_p9 }
  0x2e   : > { %p792_p7 = pneg %p791_p6 }
  0xa5   : > { %v355_v13 = vpop.f32.mrf.mxu0 }
  0xa6   : > { %v356_v14 = vadd.f32 %v735_v11, %v355_v13  ;;  %v402_v15 = vpop.f32.mrf.mxu1 }
  0xa7   : > { %v403_v16 = vadd.f32 %v736_v12, %v402_v15 }
  0xa8   : > { %359 = vst.msk [vmem:[#allocation2] sm:$0xff] %vm358_vm1, %v356_v14 }
  0xa9   : > { %476 = vrot.lane.b32.xlu1 %v403_v16, %s858_s15  ;;  %660 = vmatpush.xpose.msk.msra.mxu2 %vm358_vm1, %v403_v16  ;;  %s793_s15 = scalar_lea.hbm %s1074_s6, 16 }
  0xaa   : > { %p795_p10 = scmp.lt.s32.totalorder %s793_s15, %s789_s24 }
  0xac   : > { %p796_p13 = por %p795_p10, %p794_p8 }
  0xae   : > { %p797_p0 = pnand %p796_p13, %p792_p7 }
  0xaf   : > { %v405_v17 = vld [vmem:[#allocation2] sm:$0xff] }
  0xb0   : > { %661 = vmatmul.msk.f32.vlgmr.msra.gmra.mxu2 %vm358_vm1, %v405_v17 }
 0x11b   : > { %v477_v19 = vpop.permute.xlu1 %476 }
 0x11c   : > { %497 = vmatpush.msra.mxu3 %v477_v19 }
 0x133   : > { %v430_v23 = vpop.f32.mrf.mxu2 }
 0x134   : > { %v443_v24 = vsel %vm442_vm3, %v430_v23, -1e+30 }
 0x135   : > { %v446_v25 = vsel %vm445_vm4, %v443_v24, -inf }
 0x136   : > { %447 = vmax.xlane.f32.xlu0 %v446_v25 }
 0x1a9   : > { %v448_v28 = vpop.xlane.xlu0 %447 }
 0x1aa   : > { %v449_v29 = vmax.f32 %v444_v27, %v448_v28 }
 0x1ac   : > { %v450_v30 = vsub.f32 %v444_v27, %v449_v29  ;;  %504 = vst.msk [vmem:[#allocation3] sm:$0xff] %vm360_vm2, %v449_v29  ;;  %455 = vperm.xlu0 %733, %v449_v29  }
 0x1ae   : > { %v451_v31 = vmul.f32 1.442695, %v450_v30 }
 0x1b0   : > { %737 = vpow2.f32 %v451_v31 }
 0x1b6   : > { %v738_v32 = vpop.eup %737 }
 0x1b7   : > { %472 = vperm.xlu2 %734, %v738_v32   ;;  %v462_v39 = vmul.f32 %v738_v32, %v461_v38 }
 0x211   : > { %v473_v44 = vpop.permute.xlu2 %472 }
 0x212   : > { %v475_v45 = vmul.f32 %v473_v44, %v469_v43 }
 0x21e   : > { %v456_v33 = vpop.permute.xlu0 %455 }
 0x21f   : > { %v458_v34 = vsub.f32 %v443_v24, %v456_v33 }
 0x221   : > { %v459_v35 = vmul.f32 1.442695, %v458_v34 }
 0x223   : > { %739 = vpow2.f32 %v459_v35 }
 0x229   : > { %v740_v36 = vpop.eup %739 }
 0x22a   : > { %662 = vmatmul.msk.f32.vlgmr.msra.gmra.mxu3 %vm445_vm4, %v740_v36  ;;  %v463_v37 = vsel %vm445_vm4, %v740_v36, 0.0 }
 0x22b   : > { %464 = vadd.xlane.f32.xlu1 %v463_v37 }
 0x29e   : > { %v465_v40 = vpop.xlane.xlu1 %464 }
 0x29f   : > { %v466_v41 = vadd.f32 %v465_v40, %v462_v39 }
 0x2a1   : > { %468 = vst.msk [vmem:[#allocation4] sm:$0xff] %vm360_vm2, %v466_v41 }
 0x2a8   : > { %v508_v42 = vld [vmem:[#allocation4] sm:$0xff] }
 0x2a9   : > { %741 = vrcp.f32 %v508_v42  ;;  %v520_v51 = vand.u32 2147483648, %v508_v42  ;;  %v518_v53 = vand.u32 2147483647, %v508_v42  ;;  %vm514_vm6 = vweird.f32 %v508_v42 }
 0x2ab   : > { %v521_v55 = vor.u32 1.1754944e-38, %v520_v51  ;;  %vm519_vm8 = vcmp.eq.f32.partialorder %v518_v53, 8.507059e+37 }
 0x2ad   : > { %v499_v46 = vpop.f32.mrf.mxu3 }
 0x2ae   : > { %v502_v47 = vadd.f32 %v499_v46, %v475_v45 }
 0x2af   : > { %v742_v48 = vpop.eup %741 }
 0x2b0   : > { %503 = vst.msk [vmem:[#allocation5] sm:$0xff] %vm358_vm1, %v502_v47  ;;  %v510_v49 = vmul.f32 %v742_v48, %v508_v42  ;;  %vm515_vm5 = vweird.f32 %v742_v48 }
 0x2b1   : > { %vm516_vm7 = vmor %vm514_vm6, %vm515_vm5 }
 0x2b2   : > { %v511_v50 = vsub.f32 1.0, %v510_v49 }
 0x2b4   : > { %v512_v52 = vmul.f32 %v742_v48, %v511_v50 }
 0x2b6   : > { %v513_v54 = vadd.f32 %v742_v48, %v512_v52 }
 0x2b7   : > { %v524_v58 = vld [vmem:[#allocation5] sm:$0xff] }
 0x2b8   : > { %v517_v56 = vsel %vm516_vm7, %v742_v48, %v513_v54 }
 0x2b9   : > { %v522_v57 = vsel %vm519_vm8, %v521_v55, %v517_v56 }
 0x2ba   : > { %527 = vperm.xlu2 %734, %v522_v57  }
 0x314   : > { %v528_v59 = vpop.permute.xlu2 %527 }
 0x315   : > { %v530_v60 = vmul.f32 %v528_v59, %v524_v58 }
 0x317   : > { %532 = vst.msk [vmem:[%s313_s27] sm:$0xff] %vm358_vm1, %v530_v60 }
 0x318   : > { %800 = shalt.err (!%p797_p0)
}
 0x319   : > { %669 = dma.vmem_to_hbm [thread:$0]  (%p947_p9), %s548_s9, 128, %s550_s28, %s534_s13  }
 0x31a PF: > { %s561_s30 = sand.u32 1, %s835_s21   ;;  %p676_p1 = pnand %p651_p12, %p954_p11 }
 0x31b   : > { %s562_s18 = scalar_lea.sflag [#allocation8], %s561_s30 }
 0x31c   : > { %p677_p2 = pneg %p676_p1 }
 0x31e   : > { %830 = dma.done.wait (%p677_p2), %s562_s18, 128  }
 0x31f   : > { %832 = vsyncadd (%p677_p2), %s562_s18, 4294967168  ;;  %s22_s26 = sadd.s32 1, %s855_s26   ;;  %s1081_s21 = smov %s839_s22 }
 0x320   : > { %p19_p3 = scmp.ge.s32.totalorder %s22_s26, 4   ;;  %s1082_s22 = smov %s843_s23 }
 0x321   : > { %s1083_s23 = smov %s952_s11  ;;  %s1084_s24 = smov %s851_s25 }
 0x322   : > { %s1085_s25 = smov %s1087_s29  ;;  %21 = sbr.rel (!%p19_p3) target bundleno = 6 (0x6), region = 104 }
 0x327   :  { %568 = vsyncpa [#allocation7], 1 }
 0x328   :  { %570 = vsyncpa [#allocation7 + $0x1], 1 }
 0x329   :  { %571 = vsyncpa [#allocation8], 1 }
 0x32a   :  { %573 = vsyncpa [#allocation8 + $0x1], 1 }

// kernel: tpu_custom_call.1
= control target key start
LH: loop header
LB: loop body
LE: loop exit
PB: predicated region body
PF: predicated region fallthrough
CT: control target
= control target key end

     0   :  { %11 = vsyncpa [#allocation7], 0  ;;  %s1068_s0 = inlined_call_operand.vmem [shape: f32[2,8,32], index: 0, kind: input, shape index: {}]   ;;  %s1069_s1 = inlined_call_operand.hbm [shape: f32[2,8,32], index: 1, kind: input, shape index: {}]   ;;  %s1070_s2 = inlined_call_operand.vmem [shape: f32[32,16], index: 2, kind: input, shape index: {}]   ;;  %s1071_s3 = inlined_call_operand.vmem [shape: f32[1,16], index: 3, kind: input, shape index: {}]   ;;  %s1072_s4 = inlined_call_operand.vmem [shape: f32[32,32], index: 4, kind: input, shape index: {}]   ;;  %s1073_s5 = inlined_call_operand.vmem [shape: f32[1,32], index: 5, kind: input, shape index: {}]   ;;  %s1074_s6 = inlined_call_operand.hbm [shape: f32[2,8,16], index: 6, kind: output, shape index: {}]  }
   0x1   :  { %13 = vsyncpa [#allocation7 + $0x1], 0 }
   0x2   :  { %14 = vsyncpa [#allocation8], 0 }
   0x3   :  { %16 = vsyncpa [#allocation8 + $0x1], 0  ;;  %s896_s21 = smov 0   ;;  %s898_s22 = smov 0  }
   0x4   :  { %s900_s23 = smov 0   ;;  %s902_s24 = smov 0  }
   0x5   :  { %s904_s25 = smov 0   ;;  %s906_s26 = smov 0  }
   0x6 LB: > { %s648_s27 = sadd.s32 4294967295, %s855_s26   ;;  %s649_s28 = sadd.s32 4294967294, %s855_s26   ;;  %s855_s26 = sphi %s906_s26, %s22_s26   ;;  %s851_s25 = sphi %s904_s25, %s1085_s25   ;;  %s847_s24 = sphi %s902_s24, %s1084_s24   ;;  %s843_s23 = sphi %s900_s23, %s1083_s23   ;;  %s839_s22 = sphi %s898_s22, %s1082_s22   ;;  %s835_s21 = sphi %s896_s21, %s1081_s21  }
   0x7   : > { %s41_s29 = sadd.s32 1, %s851_s25  ;;  %s78_s30 = sadd.s32 1, %s843_s23 }
   0x8   : > { %p43_p0 = scmp.ge.s32.totalorder %s41_s29, 2  ;;  %p85_p1 = scmp.ne.s32.totalorder %s843_s23, %s839_s22 }
   0x9   : > { %p86_p2 = scmp.eq.s32.totalorder %s855_s26, 0  ;;  %p91_p3 = scmp.ne.s32.totalorder %s839_s22, %s835_s21 }
   0xa   : > { %s1087_s29 = smov (%p43_p0, %s41_s29), 0  ;;  %p92_p5 = scmp.eq.s32.totalorder %s648_s27, 0 }
   0xb   : > { %p937_p4 = por %p86_p2, %p85_p1  ;;  %s73_s8 = ssub.s32 %s851_s25, %s1087_s29 }
   0xc   : > { %p201_p6 = scmp.eq.s32.totalorder %s648_s27, 1  ;;  %p76_p7 = scmp.eq.s32.totalorder %s73_s8, 0 }
   0xd   : > { %p943_p8 = por %p92_p5, %p91_p3  ;;  %p207_p10 = scmp.eq.s32.totalorder %s649_s28, 1 }
   0xe   : > { %p947_p9 = por %p201_p6, %p85_p1  ;;  %p651_p12 = scmp.ge.s32.totalorder %s855_s26, 2 }
   0xf   : > { %s952_s11 = scalar_select %p76_p7, %s843_s23, %s78_s30  }
  0x10   : > { %p954_p11 = por %p207_p10, %p91_p3  ;;  %p679_p13 = scmp.lt.s32.totalorder %s855_s26, 2 }
  0x11   : > { %s249_s13 = sand.u32 1, %s843_s23   ;;  %s653_s15 = sshll.u32 %s851_s25, 3 }
  0x12   : > { %s652_s14 = sshll.u32 %s249_s13, 3  ;;  %s258_s18 = scalar_lea.hbm %s1069_s1, %s653_s15 }
  0x13   : > { %s253_s19 = scalar_lea.vmem [#allocation6], %s652_s14  ;;  %s260_s27 = sshll.u32 %s258_s18, 4  ;;  %s261_s27 = int_to_ptr.hbm [resolvable:$true] %s260_s27 }
  0x14   : > { %s262_s20 = sshll.u32 %s253_s19, 4  ;;  %p672_p0 = pnand %p679_p13, %p937_p4  ;;  %s263_s20 = int_to_ptr.vmem [resolvable:$true] %s262_s20 }
  0x15   : > { %p654_p1 = scmp.ge.s32.totalorder %s855_s26, 1  ;;  %p267_p2 = scmp.lt.s32.totalorder %s855_s26, 3 }
  0x16   : > { %s250_s28 = scalar_lea.sflag [#allocation7], %s249_s13 }
  0x17   : > { %674 = dma.hbm_to_vmem [thread:$0]  (!%p672_p0), %s261_s27, 128, %s263_s20, %s250_s28  }
  0x18   : > { %p268_p3 = pnand %p654_p1, %p267_p2 }
  0x19   : > { %s970_s30 = sand.u32 (!%p268_p3), 1, %s839_s22  }
  0x1a   : > { %271 = sbr.rel (%p268_p3) target bundleno = 794 (0x31a), region = 44  ;;  %s1075_s8 = sshll.u32 (!%p268_p3), %s970_s30, 3 }
  0x1b   : > { %s274_s14 = scalar_lea.sflag (!%p268_p3), [#allocation7], %s970_s30  ;;  %s277_s15 = scalar_lea.vmem (!%p268_p3), [#allocation6], %s1075_s8 }
  0x1f   : > { %826 = dma.done.wait (%p943_p8), %s274_s14, 128  }
  0x20   : > { %828 = vsyncadd (%p943_p8), %s274_s14, 4294967168  ;;  %p314_p4 = scmp.lt.s32.totalorder %s847_s24, 1  ;;  %v329_v0 = vld [vmem:[%s1070_s2 + $0x18] sm:$0xff]  ;;  %v328_v1 = vld [vmem:[%s1070_s2 + $0x10] sm:$0xff]  ;;  %vm334_vm0 = vcmask 261120   ;;  %vm358_vm1 = vcmask 130048   ;;  %v434_v20 = vlaneseq }
  0x21   : > { %350 = vmatpush.msra.mxu0 %v329_v0  ;;  %v376_v2 = vld [vmem:[%s1072_s4 + $0x18] sm:$0xff]  ;;  %v327_v3 = vld [vmem:[%s1070_s2 + $0x8] sm:$0xff]  ;;  %v375_v4 = vld [vmem:[%s1072_s4 + $0x10] sm:$0xff]  ;;  %v857_v10 = vmov 0.0   ;;  %vm360_vm2 = vcmask 7168   ;;  %v859_v18 = vmov -inf  }
  0x22   : > { %s315_s7 = scalar_select %p314_p4, %s847_s24, 1  ;;  %397 = vmatpush.msra.mxu1 %v376_v2  ;;  %v374_v5 = vld [vmem:[%s1072_s4 + $0x8] sm:$0xff]  ;;  %v326_v6 = vld [vmem:[%s1070_s2] sm:$0xff]  ;;  %363 = vst.msk [vmem:[#allocation5] sm:$0xff] %vm358_vm1, %v857_v10  ;;  %v435_v21 = vshrl.u32 %v434_v20, 7  ;;  %v439_v22 = vand.u32 127, %v434_v20 }
  0x23   : > { %351 = vmatpush.msra.mxu0 %v328_v1  ;;  %v373_v8 = vld [vmem:[%s1072_s4] sm:$0xff]  ;;  %361 = vst.msk [vmem:[#allocation3] sm:$0xff] %vm360_vm2, %v859_v18  ;;  %vm445_vm4 = vcmask 64512   ;;  %v860_v26 = vmov 0   ;;  %s664_s16 = sshll.u32 %s847_s24, 3  ;;  %s1080_s20 = sshll.u32 %s970_s30, 3 }
  0x24   : > { %s657_s13 = sshll.u32 %s315_s7, 3  ;;  %398 = vmatpush.msra.mxu1 %v375_v4  ;;  %v372_v9 = vld [vmem:[%s277_s15] sm:$0xff]  ;;  %s858_s15 = smov 112   ;;  %362 = vst.msk [vmem:[#allocation4] sm:$0xff] %vm360_vm2, %v857_v10  ;;  %vm442_vm3 = vcmp.le.s32.totalorder %v439_v22, %v435_v21  ;;  %733 = vset.pattern.permute.xlu0 %v860_v26 }
  0x25   : > { %s320_s8 = scalar_lea.vmem %s1068_s0, %s657_s13  ;;  %352 = vmatpush.msra.mxu0 %v327_v3  ;;  %v735_v11 = vld [vmem:[%s1071_s3] ss:$0 sm:$0xff]  ;;  %734 = vset.pattern.permute.xlu2 %v860_v26  ;;  %s545_s19 = scalar_lea.hbm %s1074_s6, %s664_s16 }
  0x26   : > { %v325_v7 = vld [vmem:[%s320_s8] sm:$0xff]  ;;  %399 = vmatpush.msra.mxu1 %v374_v5  ;;  %s313_s27 = scalar_lea.vmem [#allocation9], %s1080_s20  ;;  %s549_s28 = sshll.u32 %s545_s19, 4  ;;  %s550_s28 = int_to_ptr.hbm [resolvable:$true] %s549_s28 }
  0x27   : > { %353 = vmatpush.msra.mxu0 %v326_v6  ;;  %v736_v12 = vld [vmem:[%s1073_s5] ss:$0 sm:$0xff]  ;;  %s547_s9 = sshll.u32 %s313_s27, 4  ;;  %s534_s13 = scalar_lea.sflag [#allocation8], %s970_s30  ;;  %s548_s9 = int_to_ptr.vmem [resolvable:$true] %s547_s9 }
  0x28   : > { %658 = vmatmul.msk.f32.vlgmr.msra.gmra.mxu0 %vm334_vm0, %v325_v7  ;;  %400 = vmatpush.msra.mxu1 %v373_v8  ;;  %s787_s14 = sshra.s32 %s550_s28, 4  ;;  %s788_s14 = int_to_ptr.hbm [resolvable:$true] %s787_s14 }
  0x29   : > { %659 = vmatmul.msk.f32.vlgmr.msra.gmra.mxu1 %vm334_vm0, %v372_v9  ;;  %v469_v43 = vld [vmem:[#allocation5] sm:$0xff]  ;;  %s789_s24 = scalar_lea.hbm %s788_s14, 8  ;;  %p794_p8 = scmp.lt.s32.totalorder %s788_s14, %s1074_s6 }
  0x2a   : > { %v444_v27 = vld [vmem:[#allocation3] sm:$0xff]  ;;  %p790_p5 = scmp.ne.s32.totalorder %s788_s14, %s789_s24 }
  0x2b   : > { %v461_v38 = vld [vmem:[#allocation4] sm:$0xff] }
  0x2c   : > { %p791_p6 = pnand %p790_p5, %p947_p9 }
  0x2e   : > { %p792_p7 = pneg %p791_p6 }
  0xa5   : > { %v355_v13 = vpop.f32.mrf.mxu0 }
  0xa6   : > { %v356_v14 = vadd.f32 %v735_v11, %v355_v13  ;;  %v402_v15 = vpop.f32.mrf.mxu1 }
  0xa7   : > { %v403_v16 = vadd.f32 %v736_v12, %v402_v15 }
  0xa8   : > { %359 = vst.msk [vmem:[#allocation2] sm:$0xff] %vm358_vm1, %v356_v14 }
  0xa9   : > { %476 = vrot.lane.b32.xlu1 %v403_v16, %s858_s15  ;;  %660 = vmatpush.xpose.msk.msra.mxu2 %vm358_vm1, %v403_v16  ;;  %s793_s15 = scalar_lea.hbm %s1074_s6, 16 }
  0xaa   : > { %p795_p10 = scmp.lt.s32.totalorder %s793_s15, %s789_s24 }
  0xac   : > { %p796_p13 = por %p795_p10, %p794_p8 }
  0xae   : > { %p797_p0 = pnand %p796_p13, %p792_p7 }
  0xaf   : > { %v405_v17 = vld [vmem:[#allocation2] sm:$0xff] }
  0xb0   : > { %661 = vmatmul.msk.f32.vlgmr.msra.gmra.mxu2 %vm358_vm1, %v405_v17 }
 0x11b   : > { %v477_v19 = vpop.permute.xlu1 %476 }
 0x11c   : > { %497 = vmatpush.msra.mxu3 %v477_v19 }
 0x133   : > { %v430_v23 = vpop.f32.mrf.mxu2 }
 0x134   : > { %v443_v24 = vsel %vm442_vm3, %v430_v23, -1e+30 }
 0x135   : > { %v446_v25 = vsel %vm445_vm4, %v443_v24, -inf }
 0x136   : > { %447 = vmax.xlane.f32.xlu0 %v446_v25 }
 0x1a9   : > { %v448_v28 = vpop.xlane.xlu0 %447 }
 0x1aa   : > { %v449_v29 = vmax.f32 %v444_v27, %v448_v28 }
 0x1ac   : > { %v450_v30 = vsub.f32 %v444_v27, %v449_v29  ;;  %504 = vst.msk [vmem:[#allocation3] sm:$0xff] %vm360_vm2, %v449_v29  ;;  %455 = vperm.xlu0 %733, %v449_v29  }
 0x1ae   : > { %v451_v31 = vmul.f32 1.442695, %v450_v30 }
 0x1b0   : > { %737 = vpow2.f32 %v451_v31 }
 0x1b6   : > { %v738_v32 = vpop.eup %737 }
 0x1b7   : > { %472 = vperm.xlu2 %734, %v738_v32   ;;  %v462_v39 = vmul.f32 %v738_v32, %v461_v38 }
 0x211   : > { %v473_v44 = vpop.permute.xlu2 %472 }
 0x212   : > { %v475_v45 = vmul.f32 %v473_v44, %v469_v43 }
 0x21e   : > { %v456_v33 = vpop.permute.xlu0 %455 }
 0x21f   : > { %v458_v34 = vsub.f32 %v443_v24, %v456_v33 }
 0x221   : > { %v459_v35 = vmul.f32 1.442695, %v458_v34 }
 0x223   : > { %739 = vpow2.f32 %v459_v35 }
 0x229   : > { %v740_v36 = vpop.eup %739 }
 0x22a   : > { %662 = vmatmul.msk.f32.vlgmr.msra.gmra.mxu3 %vm445_vm4, %v740_v36  ;;  %v463_v37 = vsel %vm445_vm4, %v740_v36, 0.0 }
 0x22b   : > { %464 = vadd.xlane.f32.xlu1 %v463_v37 }
 0x29e   : > { %v465_v40 = vpop.xlane.xlu1 %464 }
 0x29f   : > { %v466_v41 = vadd.f32 %v465_v40, %v462_v39 }
 0x2a1   : > { %468 = vst.msk [vmem:[#allocation4] sm:$0xff] %vm360_vm2, %v466_v41 }
 0x2a8   : > { %v508_v42 = vld [vmem:[#allocation4] sm:$0xff] }
 0x2a9   : > { %741 = vrcp.f32 %v508_v42  ;;  %v520_v51 = vand.u32 2147483648, %v508_v42  ;;  %v518_v53 = vand.u32 2147483647, %v508_v42  ;;  %vm514_vm6 = vweird.f32 %v508_v42 }
 0x2ab   : > { %v521_v55 = vor.u32 1.1754944e-38, %v520_v51  ;;  %vm519_vm8 = vcmp.eq.f32.partialorder %v518_v53, 8.507059e+37 }
 0x2ad   : > { %v499_v46 = vpop.f32.mrf.mxu3 }
 0x2ae   : > { %v502_v47 = vadd.f32 %v499_v46, %v475_v45 }
 0x2af   : > { %v742_v48 = vpop.eup %741 }
 0x2b0   : > { %503 = vst.msk [vmem:[#allocation5] sm:$0xff] %vm358_vm1, %v502_v47  ;;  %v510_v49 = vmul.f32 %v742_v48, %v508_v42  ;;  %vm515_vm5 = vweird.f32 %v742_v48 }
 0x2b1   : > { %vm516_vm7 = vmor %vm514_vm6, %vm515_vm5 }
 0x2b2   : > { %v511_v50 = vsub.f32 1.0, %v510_v49 }
 0x2b4   : > { %v512_v52 = vmul.f32 %v742_v48, %v511_v50 }
 0x2b6   : > { %v513_v54 = vadd.f32 %v742_v48, %v512_v52 }
 0x2b7   : > { %v524_v58 = vld [vmem:[#allocation5] sm:$0xff] }
 0x2b8   : > { %v517_v56 = vsel %vm516_vm7, %v742_v48, %v513_v54 }
 0x2b9   : > { %v522_v57 = vsel %vm519_vm8, %v521_v55, %v517_v56 }
 0x2ba   : > { %527 = vperm.xlu2 %734, %v522_v57  }
 0x314   : > { %v528_v59 = vpop.permute.xlu2 %527 }
 0x315   : > { %v530_v60 = vmul.f32 %v528_v59, %v524_v58 }
 0x317   : > { %532 = vst.msk [vmem:[%s313_s27] sm:$0xff] %vm358_vm1, %v530_v60 }
 0x318   : > { %800 = shalt.err (!%p797_p0)
}
 0x319   : > { %669 = dma.vmem_to_hbm [thread:$0]  (%p947_p9), %s548_s9, 128, %s550_s28, %s534_s13  }
 0x31a PF: > { %s561_s30 = sand.u32 1, %s835_s21   ;;  %p676_p1 = pnand %p651_p12, %p954_p11 }
 0x31b   : > { %s562_s18 = scalar_lea.sflag [#allocation8], %s561_s30 }
 0x31c   : > { %p677_p2 = pneg %p676_p1 }
 0x31e   : > { %830 = dma.done.wait (%p677_p2), %s562_s18, 128  }
 0x31f   : > { %832 = vsyncadd (%p677_p2), %s562_s18, 4294967168  ;;  %s22_s26 = sadd.s32 1, %s855_s26   ;;  %s1081_s21 = smov %s839_s22 }
 0x320   : > { %p19_p3 = scmp.ge.s32.totalorder %s22_s26, 4   ;;  %s1082_s22 = smov %s843_s23 }
 0x321   : > { %s1083_s23 = smov %s952_s11  ;;  %s1084_s24 = smov %s851_s25 }
 0x322   : > { %s1085_s25 = smov %s1087_s29  ;;  %21 = sbr.rel (!%p19_p3) target bundleno = 6 (0x6), region = 104 }
 0x327   :  { %568 = vsyncpa [#allocation7], 1 }
 0x328   :  { %570 = vsyncpa [#allocation7 + $0x1], 1 }
 0x329   :  { %571 = vsyncpa [#allocation8], 1 }
 0x32a   :  { %573 = vsyncpa [#allocation8 + $0x1], 1 }

</bundles_post_ra>
